<compile_context>
chip_gen: v7x
topology: tpu7x:2x2x1
jax: 0.10.0
libtpu: 0.0.40
codegen_flags: <defaults>
</compile_context>

<pallas_src>
import jax
import jax.numpy as jnp
from jax.experimental import pallas as pl
from jax.experimental.pallas import tpu as pltpu

_SINGLE_BLOCK_BYTES = 1 << 20               # <= 1 MiB: one grid-less block
_LANE_CANDIDATES = (8192, 4096, 2048, 1024, 512, 256, 128)


def _mul_scalar_kernel(scalar_ref, x_ref, o_ref):
    # scalar_ref: (1,) f32 in SMEM; x_ref / o_ref: VMEM tiles.
    # Casting the scalar to x.dtype matches PyTorch for floating tensors (the
    # spec's case); integer-tensor * float-scalar type promotion is not
    # reproduced here.
    o_ref[...] = x_ref[...] * scalar_ref[0].astype(x_ref.dtype)


def _block_policy():
    """(block_bytes, vmem_limit_bytes), tuned per TPU generation."""
    block_bytes = 2 << 20                   # conservative default
    vmem_limit = 32 << 20
    try:
        info = pltpu.get_tpu_info()
        cap = getattr(info, "vmem_capacity_bytes", 128 << 20)
        if cap <= (80 << 20):               # v7x-class: 64 MiB VMEM per TC
            block_bytes = 4 << 20
            vmem_limit = 32 << 20
        else:                               # v5e / v6e: 128 MiB physical VMEM
            block_bytes = 4 << 20
            vmem_limit = 48 << 20
    except Exception:
        pass
    return block_bytes, vmem_limit


def _choose_tiling(n, itemsize, block_bytes):
    """Lane-dense (rows, lanes) slab + block_rows. Requires n % 128 == 0."""
    sub = max(8, 32 // itemsize)            # dtype-aware sublane granularity
    lanes = 128
    for cand in _LANE_CANDIDATES:
        if n % cand == 0 and n // cand >= 2 * sub:
            lanes = cand
            break
    rows = n // lanes

    target_rows = max(sub, block_bytes // (lanes * itemsize))
    target_rows = (target_rows // sub) * sub
    # Keep >= 2 grid steps so the "parallel" axis can use both v7x TCs.
    cap = max(sub, min(target_rows, (rows // (2 * sub)) * sub))

    # Prefer a block_rows that divides rows evenly (every block full ->
    # unmasked stores, uniform DMA); otherwise fall back to `cap` and let
    # Pallas clip the overhanging final block.
    block_rows = cap
    c = cap
    for _ in range(4096):
        if c < sub:
            break
        if rows % c == 0:
            block_rows = c
            break
        c -= sub
    return lanes, rows, block_rows


def mul_scalar(x, scalar=1.0, *, donate_x=False):
    orig_shape = x.shape
    dtype = x.dtype
    n = x.size
    if n == 0:
        return x

    itemsize = jnp.dtype(dtype).itemsize
    nbytes = n * itemsize
    scalar_arr = jnp.asarray([scalar], dtype=jnp.float32)
    x_flat = x.reshape(-1)

    # ---- Small inputs: single grid-less block, no pipeline machinery. ----
    if nbytes <= _SINGLE_BLOCK_BYTES:
        if n % 128 == 0:
            rows, lanes = n // 128, 128
        else:
            rows, lanes = 1, n              # full-array block: no (8,128) issue
        x2d = x_flat.reshape(rows, lanes)
        out2d = pl.pallas_call(
            _mul_scalar_kernel,
            out_shape=jax.ShapeDtypeStruct((rows, lanes), dtype),
            in_specs=[
                pl.BlockSpec(memory_space=pltpu.MemorySpace.SMEM),   # scalar
                pl.BlockSpec(memory_space=pltpu.MemorySpace.VMEM),   # x
            ],
            out_specs=pl.BlockSpec(memory_space=pltpu.MemorySpace.VMEM),
        )(scalar_arr, x2d)
        return out2d.reshape(orig_shape)

    # ---- Large ragged totals: single fused XLA pass (1x read + 1x write);
    # any pad/slice/concat around the kernel would ~3x the HBM traffic. ----
    if n % 128 != 0:
        # TODO(synk): an in-kernel-masked 1-D tiling could keep ragged shapes
        # in Pallas; not worth the risk for a shape the spec never produces.
        return x * jnp.asarray(scalar, dtype=dtype)

    # ---- Streaming path: lane-dense slab, multi-MiB blocks, 1-D grid. ----
    block_bytes, vmem_limit = _block_policy()
    lanes, rows, block_rows = _choose_tiling(n, itemsize, block_bytes)
    x2d = x_flat.reshape(rows, lanes)

    grid = (pl.cdiv(rows, block_rows),)
    extra = {}
    if donate_x:
        # x2d (operand 1) aliases output 0: same shape/dtype. Use only when
        # the caller can donate x's buffer.
        extra["input_output_aliases"] = {1: 0}

    out2d = pl.pallas_call(
        _mul_scalar_kernel,
        out_shape=jax.ShapeDtypeStruct((rows, lanes), dtype),
        grid=grid,
        in_specs=[
            pl.BlockSpec(memory_space=pltpu.MemorySpace.SMEM),      # scalar
            pl.BlockSpec((block_rows, lanes), lambda i: (i, 0)),    # x tile
        ],
        out_specs=pl.BlockSpec((block_rows, lanes), lambda i: (i, 0)),
        compiler_params=pltpu.CompilerParams(
            dimension_semantics=("parallel",),
            vmem_limit_bytes=vmem_limit),
        cost_estimate=pl.CostEstimate(
            flops=n, transcendentals=0, bytes_accessed=2 * n * itemsize),
        **extra,
    )(scalar_arr, x2d)
    return out2d.reshape(orig_shape)


if __name__ == "__main__":
    key = jax.random.PRNGKey(0)
    # Small NCHW input consistent with the module's forward.
    x = jax.random.normal(key, (2, 4, 16, 16), dtype=jnp.float32)
    scalar = 1.0  # default from TestMulScalarModel(scalar=1.0)

    y = jax.block_until_ready(mul_scalar(x, scalar))
    assert y.shape == x.shape and y.dtype == x.dtype
    assert jnp.allclose(y, x * scalar, atol=0, rtol=0)

    # Second, non-trivial scalar value (same kernel; scalar rides in SMEM).
    y2 = jax.block_until_ready(mul_scalar(x, 2.5))
    assert jnp.allclose(y2, x * 2.5, atol=1e-6, rtol=1e-6)

    # Exercise the tiled streaming path once (lane-dense 8 MiB input).
    xl = jax.random.normal(jax.random.PRNGKey(1), (1024, 2048), dtype=jnp.float32)
    yl = jax.block_until_ready(mul_scalar(xl, 0.5))
    assert jnp.allclose(yl, xl * 0.5, atol=0, rtol=0)

    print("KERNEL_OK")
</pallas_src>

<mosaic_0001>
module attributes {stable_mosaic.version = 11 : i64} {
  func.func @_mul_scalar_kernel(%arg0: memref<1xf32, #tpu.memory_space<smem>>, %arg1: memref<16x128xf32, #tpu.memory_space<vmem>>, %arg2: memref<16x128xf32, #tpu.memory_space<vmem>>) attributes {dimension_semantics = [], scalar_prefetch = 0 : i64, scratch_operands = 0 : i64, tpu.core_type = #tpu.core_type<tc>} {
    %c0 = arith.constant 0 : index
    %c0_0 = arith.constant 0 : index
    %0 = vector.load %arg1[%c0, %c0_0] : memref<16x128xf32, #tpu.memory_space<vmem>>, vector<16x128xf32>
    %c0_1 = arith.constant 0 : index
    %1 = memref.load %arg0[%c0_1] : memref<1xf32, #tpu.memory_space<smem>>
    %2 = vector.broadcast %1 : f32 to vector<16x128xf32>
    %3 = arith.mulf %0, %2 : vector<16x128xf32>
    %c0_2 = arith.constant 0 : index
    %c0_3 = arith.constant 0 : index
    %4 = vector.load %arg2[%c0_2, %c0_3] : memref<16x128xf32, #tpu.memory_space<vmem>>, vector<16x128xf32>
    tpu.vector_store %arg2[%c0_2, %c0_3], %3 {strides = array<i32>} : memref<16x128xf32, #tpu.memory_space<vmem>>, vector<16x128xf32>,
    return
  }
}

</mosaic_0001>

<bundles_post_ra>
// kernel: tpu_custom_call.1
= control target key start
LH: loop header
LB: loop body
LE: loop exit
PB: predicated region body
PF: predicated region fallthrough
CT: control target
= control target key end

     0   :  { %8 = vsyncpa [#allocation4], 0  ;;  %s156_s0 = inlined_call_operand.<no memory space> [shape: f32[1], index: 0, kind: input, shape index: {}]   ;;  %s157_s1 = inlined_call_operand.hbm [shape: f32[16,128], index: 1, kind: input, shape index: {}]   ;;  %s158_s2 = inlined_call_operand.hbm [shape: f32[16,128], index: 2, kind: output, shape index: {}]  }
   0x1   :  { %9 = vsyncpa [#allocation5], 0  ;;  %s104_s9 = smov [#allocation3]   ;;  %s56_s13 = scalar_lea.hbm %s157_s1, 256 }
   0x2   :  { %s17_s10 = sshll.u32 %s104_s9, 4  ;;  %p57_p0 = scmp.ne.s32.totalorder %s157_s1, %s56_s13  ;;  %s18_s10 = int_to_ptr.vmem [resolvable:$true] %s17_s10 }
   0x3   :  { %p60_p1 = scmp.lt.u32.totalorder %s56_s13, %s157_s1 }
   0x5   :  { %p62_p2 = pnand %p60_p1, %p57_p0 }
   0x7   :  { %65 = shalt.err (!%p62_p2)
}
   0x8   :  { %s66_s18 = scalar_lea.vmem %s18_s10, 256  ;;  %p71_p4 = scmp.lt.s32.totalorder %s18_s10, %s18_s10 }
   0x9   :  { %p67_p3 = scmp.ne.s32.totalorder %s18_s10, %s66_s18  ;;  %p72_p5 = scmp.lt.s32.totalorder %s66_s18, %s66_s18 }
   0xb   :  { %p73_p6 = por %p72_p5, %p71_p4 }
   0xd   :  { %p74_p7 = pnand %p73_p6, %p67_p3 }
   0xf   :  { %77 = shalt.err (!%p74_p7)
}
  0x10   :  { %s105_s19 = smov 128   ;;  %s106_s20 = smov 8  }
  0x11   :  { %23 = dma.hbm_to_vmem [thread:$0]  %s157_s1, 256, %s18_s10, [#allocation4], %s105_s19, %s105_s19, %s106_s20  }
  0x12   :  { %100 = dma.done.wait [#allocation4], 256  }
  0x13   :  { %101 = vsyncadd [#allocation4], 4294967040  ;;  %v30_v0 = vstv %s156_s0  ;;  %s107_s25 = smov [#allocation6]   ;;  %v27_v1 = vld [vmem:[#allocation3] sm:$0xff]  ;;  %v28_v2 = vld [vmem:[#allocation3 + $0x8] sm:$0xff] }
  0x14   :  { %s40_s26 = sshll.u32 %s107_s25, 4  ;;  %v31_v3 = vmul.f32 %v30_v0, %v27_v1  ;;  %v32_v4 = vmul.f32 %v30_v0, %v28_v2  ;;  %s41_s26 = int_to_ptr.vmem [resolvable:$true] %s40_s26 }
  0x15   :  { %s78_s27 = scalar_lea.vmem %s41_s26, 256  ;;  %p83_p9 = scmp.lt.s32.totalorder %s41_s26, %s41_s26 }
  0x16   :  { %33 = vst [vmem:[#allocation6] sm:$0xff] %v31_v3  ;;  %34 = vst [vmem:[#allocation6 + $0x8] sm:$0xff] %v32_v4  ;;  %p79_p8 = scmp.ne.s32.totalorder %s41_s26, %s78_s27  ;;  %p84_p10 = scmp.lt.s32.totalorder %s78_s27, %s78_s27 }
  0x18   :  { %p85_p11 = por %p84_p10, %p83_p9 }
  0x1a   :  { %p86_p12 = pnand %p85_p11, %p79_p8 }
  0x1c   :  { %89 = shalt.err (!%p86_p12)
}
  0x1d   :  { %s90_s0 = scalar_lea.hbm %s158_s2, 256 }
  0x1e   :  { %p91_p13 = scmp.ne.s32.totalorder %s158_s2, %s90_s0  ;;  %p94_p0 = scmp.lt.u32.totalorder %s90_s0, %s158_s2 }
  0x20   :  { %p96_p1 = pnand %p94_p0, %p91_p13 }
  0x22   :  { %99 = shalt.err (!%p96_p1)
}
  0x23   :  { %46 = dma.vmem_to_hbm [thread:$0]  %s41_s26, 256, %s158_s2, [#allocation5], %s105_s19, %s105_s19, %s106_s20  }
  0x24   :  { %102 = dma.done.wait [#allocation5], 256  }
  0x25   :  { %103 = vsyncadd [#allocation5], 4294967040 }
  0x26   :  { %50 = vsyncpa [#allocation4], 1 }
  0x27   :  { %51 = vsyncpa [#allocation5], 1 }

</bundles_post_ra>
